<compile_context>
chip_gen: v6e
topology: v6e:2x2x1
jax: 0.10.0
libtpu: 0.0.40
codegen_flags: <defaults>
</compile_context>

<pallas_src>
import functools

import jax
import jax.numpy as jnp
from jax.experimental import pallas as pl
from jax.experimental.pallas import tpu as pltpu


def _pick_hw_tile(hw, max_tile):
    """Largest multiple of 128 <= max_tile that divides hw (or full extent)."""
    if hw % 128 != 0 or hw <= max_tile:
        return hw
    t = (min(max_tile, hw) // 128) * 128
    while hw % t != 0:
        t -= 128
    return t


def _channel_attention_kernel(x_ref, w1_ref, w2_ref, o_ref,
                              sum_acc, max_acc, *, lane_w, inv_hw):
    # x_ref : (1, C, hw_tile) native dtype (e.g. bf16)
    # w1_ref: (C, C//16) f32   (fc1 1x1-conv weight, pre-transposed)
    # w2_ref: (C//16, C) f32   (fc2 1x1-conv weight, pre-transposed)
    # o_ref : (1, 1, C)  f32
    # sum_acc / max_acc : (1, C, lane_w) f32 VMEM scratch
    k = pl.program_id(1)
    num_k = pl.num_programs(1)

    @pl.when(k == 0)
    def _init():
        sum_acc[...] = jnp.zeros_like(sum_acc)
        max_acc[...] = jnp.full_like(max_acc, -jnp.inf)

    # Per-chunk update: upcast the streamed tile, then purely elementwise
    # (VPU) accumulation into lane-wide partials; whole-vreg lane slices only.
    x = x_ref[...].astype(jnp.float32)                 # (1, C, hw_tile)
    hw_tile = x.shape[-1]
    n_sub = hw_tile // lane_w
    s = sum_acc[...]
    m = max_acc[...]
    for j in range(n_sub):                             # static unroll
        xs = x[:, :, j * lane_w:(j + 1) * lane_w]
        s = s + xs
        m = jnp.maximum(m, xs)
    sum_acc[...] = s
    max_acc[...] = m

    @pl.when(k == num_k - 1)
    def _finalize():
        # Single cross-lane (XLU) reduce per output block.
        avg = jnp.sum(sum_acc[...], axis=-1) * inv_hw        # (1, C)
        mx = jnp.max(max_acc[...], axis=-1)                  # (1, C)
        pooled = jnp.concatenate([avg, mx], axis=0)          # (2, C)
        # Shared MLP runs once on the stacked avg/max rows (pre-transposed W).
        h = jnp.dot(pooled, w1_ref[...],
                    preferred_element_type=jnp.float32)      # (2, C//16)
        h = jnp.maximum(h, 0.0)
        y = jnp.dot(h, w2_ref[...],
                    preferred_element_type=jnp.float32)      # (2, C)
        att = jax.nn.sigmoid(y[0:1, :] + y[1:2, :])          # (1, C)
        o_ref[...] = att.reshape(o_ref.shape)


def channel_attention(x_nchw, w1, w2, *, max_hw_tile=512):
    """x_nchw: (B, C, H, W), any float dtype; w1: (C//16, C); w2: (C, C//16).

    Returns the (B, C, 1, 1) channel-attention map (sigmoid output), f32.
    """
    B, C, H, W = x_nchw.shape
    hidden = w1.shape[0]
    HW = H * W

    hw_tile = _pick_hw_tile(HW, max_hw_tile)
    num_k = HW // hw_tile
    lane_w = 128 if hw_tile % 128 == 0 else hw_tile

    # Free (contiguous) reshape; NO dtype cast -> stream native dtype from HBM.
    x_flat = x_nchw.reshape(B, C, HW)
    # One-time host-side transpose so the kernel never transposes weights.
    w1t = jnp.asarray(w1, jnp.float32).T               # (C, hidden)
    w2t = jnp.asarray(w2, jnp.float32).T               # (hidden, C)

    kernel = functools.partial(_channel_attention_kernel,
                               lane_w=lane_w, inv_hw=1.0 / float(HW))

    # VMEM budget (per core): 2 x (C*hw_tile) double-buffered input tiles in
    # native dtype + 2 x (C*lane_w) f32 scratch + tiny weights. With the
    # default max_hw_tile=512 this stays far below the 32 MiB scoped default
    # and v7x's 64 MiB physical VMEM even at C=2048.
    out = pl.pallas_call(
        kernel,
        out_shape=jax.ShapeDtypeStruct((B, 1, C), jnp.float32),
        grid_spec=pltpu.PrefetchScalarGridSpec(
            num_scalar_prefetch=0,
            grid=(B, num_k),                            # reduction axis last
            in_specs=[
                pl.BlockSpec((1, C, hw_tile), lambda b, k: (b, 0, k)),
                pl.BlockSpec((C, hidden), lambda b, k: (0, 0)),
                pl.BlockSpec((hidden, C), lambda b, k: (0, 0)),
            ],
            out_specs=pl.BlockSpec((1, 1, C), lambda b, k: (b, 0, 0)),
            scratch_shapes=[
                pltpu.VMEM((1, C, lane_w), jnp.float32),
                pltpu.VMEM((1, C, lane_w), jnp.float32),
            ],
        ),
        compiler_params=pltpu.CompilerParams(
            dimension_semantics=("parallel", "arbitrary")),
    )(x_flat, w1t, w2t)

    return out.reshape(B, C, 1, 1)


if __name__ == "__main__":
    # in_planes=32 -> hidden = 32 // 16 = 2; 32x32 spatial so the HW grid axis
    # has >1 chunk (hw_tile=512 -> 2 chunks) and the pipeline is exercised.
    B, C, H, W = 2, 32, 32, 32
    hidden = C // 16

    key = jax.random.PRNGKey(0)
    kx, k1, k2 = jax.random.split(key, 3)

    # Native bf16 activations (what a real encoder would feed); f32 weights.
    x = jax.random.normal(kx, (B, C, H, W), dtype=jnp.float32).astype(jnp.bfloat16)
    w1 = jax.random.normal(k1, (hidden, C), dtype=jnp.float32) * (1.0 / jnp.sqrt(C))
    w2 = jax.random.normal(k2, (C, hidden), dtype=jnp.float32) * (1.0 / jnp.sqrt(hidden))

    y = channel_attention(x, w1, w2)
    jax.block_until_ready(y)

    # Plain-JAX reference of the same math (same bf16 input, f32 accumulation).
    xf = x.astype(jnp.float32)
    avg_p = jnp.mean(xf, axis=(2, 3))
    max_p = jnp.max(xf, axis=(2, 3))
    mlp = lambda p: jnp.maximum(p @ w1.T, 0.0) @ w2.T
    ref = jax.nn.sigmoid(mlp(avg_p) + mlp(max_p)).reshape(B, C, 1, 1)
    assert jnp.allclose(y, ref, atol=1e-4, rtol=1e-4), "mismatch vs reference"

    print("KERNEL_OK")
</pallas_src>

<mosaic_0001>
module attributes {stable_mosaic.version = 11 : i64} {
  func.func @_channel_attention_kernel(%arg0: i32, %arg1: i32, %arg2: memref<1x32x512xbf16, #tpu.memory_space<vmem>>, %arg3: memref<32x2xf32, #tpu.memory_space<vmem>>, %arg4: memref<2x32xf32, #tpu.memory_space<vmem>>, %arg5: memref<1x1x32xf32, #tpu.memory_space<vmem>>, %arg6: memref<1x32x128xf32, #tpu.memory_space<vmem>>, %arg7: memref<1x32x128xf32, #tpu.memory_space<vmem>>) attributes {dimension_semantics = [#tpu.dimension_semantics<parallel>, #tpu.dimension_semantics<arbitrary>], iteration_bounds = array<i64: 2, 2>, scalar_prefetch = 0 : i64, scratch_operands = 2 : i64, tpu.core_type = #tpu.core_type<tc>, window_params = [{transform_indices = @transform_0, window_bounds = array<i64: 1, 32, 512>}, {pipeline_mode = #tpu.pipeline_mode<synchronous>, transform_indices = @transform_1, window_bounds = array<i64: 32, 2>}, {pipeline_mode = #tpu.pipeline_mode<synchronous>, transform_indices = @transform_2, window_bounds = array<i64: 2, 32>}, {transform_indices = @transform_3, window_bounds = array<i64: 1, 1, 32>}]} {
    %c0_i32 = arith.constant 0 : i32
    %0 = arith.cmpi eq, %arg1, %c0_i32 : i32
    %1 = arith.extui %0 : i1 to i32
    %c0_i32_0 = arith.constant 0 : i32
    %2 = arith.cmpi ne, %1, %c0_i32_0 : i32
    scf.if %2 {
      %cst = arith.constant 0.000000e+00 : f32
      %24 = vector.broadcast %cst : f32 to vector<1x32x128xf32>
      %c0_16 = arith.constant 0 : index
      %c0_17 = arith.constant 0 : index
      %c0_18 = arith.constant 0 : index
      %25 = vector.load %arg6[%c0_16, %c0_17, %c0_18] : memref<1x32x128xf32, #tpu.memory_space<vmem>>, vector<1x32x128xf32>
      tpu.vector_store %arg6[%c0_16, %c0_17, %c0_18], %24 {strides = array<i32>} : memref<1x32x128xf32, #tpu.memory_space<vmem>>, vector<1x32x128xf32>,
      %cst_19 = arith.constant 0xFF800000 : f32
      %26 = vector.broadcast %cst_19 : f32 to vector<1x32x128xf32>
      %c0_20 = arith.constant 0 : index
      %c0_21 = arith.constant 0 : index
      %c0_22 = arith.constant 0 : index
      %27 = vector.load %arg7[%c0_20, %c0_21, %c0_22] : memref<1x32x128xf32, #tpu.memory_space<vmem>>, vector<1x32x128xf32>
      tpu.vector_store %arg7[%c0_20, %c0_21, %c0_22], %26 {strides = array<i32>} : memref<1x32x128xf32, #tpu.memory_space<vmem>>, vector<1x32x128xf32>,
    } else {
    }
    %c0 = arith.constant 0 : index
    %c0_1 = arith.constant 0 : index
    %c0_2 = arith.constant 0 : index
    %3 = vector.load %arg2[%c0, %c0_1, %c0_2] : memref<1x32x512xbf16, #tpu.memory_space<vmem>>, vector<1x32x512xbf16>
    %4 = arith.extf %3 : vector<1x32x512xbf16> to vector<1x32x512xf32>
    %c0_3 = arith.constant 0 : index
    %c0_4 = arith.constant 0 : index
    %c0_5 = arith.constant 0 : index
    %5 = vector.load %arg6[%c0_3, %c0_4, %c0_5] : memref<1x32x128xf32, #tpu.memory_space<vmem>>, vector<1x32x128xf32>
    %c0_6 = arith.constant 0 : index
    %c0_7 = arith.constant 0 : index
    %c0_8 = arith.constant 0 : index
    %6 = vector.load %arg7[%c0_6, %c0_7, %c0_8] : memref<1x32x128xf32, #tpu.memory_space<vmem>>, vector<1x32x128xf32>
    %7 = vector.extract_strided_slice %4 {offsets = [0, 0, 0], sizes = [1, 32, 128], strides = [1, 1, 1]} : vector<1x32x512xf32> to vector<1x32x128xf32>
    %8 = arith.addf %5, %7 : vector<1x32x128xf32>
    %9 = arith.maximumf %6, %7 : vector<1x32x128xf32>
    %10 = vector.extract_strided_slice %4 {offsets = [0, 0, 128], sizes = [1, 32, 128], strides = [1, 1, 1]} : vector<1x32x512xf32> to vector<1x32x128xf32>
    %11 = arith.addf %8, %10 : vector<1x32x128xf32>
    %12 = arith.maximumf %9, %10 : vector<1x32x128xf32>
    %13 = vector.extract_strided_slice %4 {offsets = [0, 0, 256], sizes = [1, 32, 128], strides = [1, 1, 1]} : vector<1x32x512xf32> to vector<1x32x128xf32>
    %14 = arith.addf %11, %13 : vector<1x32x128xf32>
    %15 = arith.maximumf %12, %13 : vector<1x32x128xf32>
    %16 = vector.extract_strided_slice %4 {offsets = [0, 0, 384], sizes = [1, 32, 128], strides = [1, 1, 1]} : vector<1x32x512xf32> to vector<1x32x128xf32>
    %17 = arith.addf %14, %16 : vector<1x32x128xf32>
    %18 = arith.maximumf %15, %16 : vector<1x32x128xf32>
    %c0_9 = arith.constant 0 : index
    %c0_10 = arith.constant 0 : index
    %c0_11 = arith.constant 0 : index
    %19 = vector.load %arg6[%c0_9, %c0_10, %c0_11] : memref<1x32x128xf32, #tpu.memory_space<vmem>>, vector<1x32x128xf32>
    tpu.vector_store %arg6[%c0_9, %c0_10, %c0_11], %17 {strides = array<i32>} : memref<1x32x128xf32, #tpu.memory_space<vmem>>, vector<1x32x128xf32>,
    %c0_12 = arith.constant 0 : index
    %c0_13 = arith.constant 0 : index
    %c0_14 = arith.constant 0 : index
    %20 = vector.load %arg7[%c0_12, %c0_13, %c0_14] : memref<1x32x128xf32, #tpu.memory_space<vmem>>, vector<1x32x128xf32>
    tpu.vector_store %arg7[%c0_12, %c0_13, %c0_14], %18 {strides = array<i32>} : memref<1x32x128xf32, #tpu.memory_space<vmem>>, vector<1x32x128xf32>,
    %c1_i32 = arith.constant 1 : i32
    %21 = arith.cmpi eq, %arg1, %c1_i32 : i32
    %22 = arith.extui %21 : i1 to i32
    %c0_i32_15 = arith.constant 0 : i32
    %23 = arith.cmpi ne, %22, %c0_i32_15 : i32
    scf.if %23 {
      %c0_16 = arith.constant 0 : index
      %c0_17 = arith.constant 0 : index
      %c0_18 = arith.constant 0 : index
      %24 = vector.load %arg6[%c0_16, %c0_17, %c0_18] : memref<1x32x128xf32, #tpu.memory_space<vmem>>, vector<1x32x128xf32>
      %cst = arith.constant dense<0.000000e+00> : vector<1x32xf32>
      %25 = vector.multi_reduction <add>, %24, %cst [2] : vector<1x32x128xf32> to vector<1x32xf32>
      %cst_19 = arith.constant 9.765625E-4 : f32
      %26 = vector.broadcast %cst_19 : f32 to vector<1x32xf32>
      %27 = arith.mulf %25, %26 : vector<1x32xf32>
      %c0_20 = arith.constant 0 : index
      %c0_21 = arith.constant 0 : index
      %c0_22 = arith.constant 0 : index
      %28 = vector.load %arg7[%c0_20, %c0_21, %c0_22] : memref<1x32x128xf32, #tpu.memory_space<vmem>>, vector<1x32x128xf32>
      %cst_23 = arith.constant dense<0xFF800000> : vector<1x32xf32>
      %29 = vector.multi_reduction <maximumf>, %28, %cst_23 [2] : vector<1x32x128xf32> to vector<1x32xf32>
      %30 = tpu.concatenate %27, %29 in 0 : vector<1x32xf32>, vector<1x32xf32> -> vector<2x32xf32>
      %c0_24 = arith.constant 0 : index
      %c0_25 = arith.constant 0 : index
      %31 = vector.load %arg3[%c0_24, %c0_25] : memref<32x2xf32, #tpu.memory_space<vmem>>, vector<32x2xf32>
      %cst_26 = arith.constant dense<0.000000e+00> : vector<2x2xf32>
      %32 = tpu.matmul %30, %31, %cst_26 {dimension_numbers = #tpu.dot_dimension_numbers<[1], [0], [0], [1], [0, 0, 1, 1], [], []>} : vector<2x32xf32>, vector<32x2xf32>, vector<2x2xf32> -> vector<2x2xf32>
      %cst_27 = arith.constant 0.000000e+00 : f32
      %33 = vector.broadcast %cst_27 : f32 to vector<2x2xf32>
      %34 = arith.maximumf %32, %33 : vector<2x2xf32>
      %c0_28 = arith.constant 0 : index
      %c0_29 = arith.constant 0 : index
      %35 = vector.load %arg4[%c0_28, %c0_29] : memref<2x32xf32, #tpu.memory_space<vmem>>, vector<2x32xf32>
      %cst_30 = arith.constant dense<0.000000e+00> : vector<2x32xf32>
      %36 = tpu.matmul %34, %35, %cst_30 {dimension_numbers = #tpu.dot_dimension_numbers<[1], [0], [0], [1], [0, 0, 1, 1], [], []>} : vector<2x2xf32>, vector<2x32xf32>, vector<2x32xf32> -> vector<2x32xf32>
      %37 = vector.extract_strided_slice %36 {offsets = [0, 0], sizes = [1, 32], strides = [1, 1]} : vector<2x32xf32> to vector<1x32xf32>
      %38 = vector.extract_strided_slice %36 {offsets = [1, 0], sizes = [1, 32], strides = [1, 1]} : vector<2x32xf32> to vector<1x32xf32>
      %39 = arith.addf %37, %38 : vector<1x32xf32>
      %40 = arith.negf %39 : vector<1x32xf32>
      %41 = math.exp %40 : vector<1x32xf32>
      %cst_31 = arith.constant 1.000000e+00 : f32
      %42 = vector.broadcast %cst_31 : f32 to vector<1x32xf32>
      %43 = arith.addf %42, %41 : vector<1x32xf32>
      %44 = arith.divf %42, %43 : vector<1x32xf32>
      %45 = vector.shape_cast %44 : vector<1x32xf32> to vector<1x1x32xf32>
      %c0_32 = arith.constant 0 : index
      %c0_33 = arith.constant 0 : index
      %c0_34 = arith.constant 0 : index
      %46 = vector.load %arg5[%c0_32, %c0_33, %c0_34] : memref<1x1x32xf32, #tpu.memory_space<vmem>>, vector<1x1x32xf32>
      tpu.vector_store %arg5[%c0_32, %c0_33, %c0_34], %45 {strides = array<i32>} : memref<1x1x32xf32, #tpu.memory_space<vmem>>, vector<1x1x32xf32>,
    } else {
    }
    return
  }
  func.func @transform_0(%arg0: i32, %arg1: i32) -> (i32, i32, i32) {
    %c0_i32 = arith.constant 0 : i32
    %c0_i32_0 = arith.constant 0 : i32
    return %arg0, %c0_i32, %arg1 : i32, i32, i32
  }
  func.func @transform_1(%arg0: i32, %arg1: i32) -> (i32, i32) {
    %c0_i32 = arith.constant 0 : i32
    %c0_i32_0 = arith.constant 0 : i32
    %c0_i32_1 = arith.constant 0 : i32
    return %c0_i32, %c0_i32_0 : i32, i32
  }
  func.func @transform_2(%arg0: i32, %arg1: i32) -> (i32, i32) {
    %c0_i32 = arith.constant 0 : i32
    %c0_i32_0 = arith.constant 0 : i32
    %c0_i32_1 = arith.constant 0 : i32
    return %c0_i32, %c0_i32_0 : i32, i32
  }
  func.func @transform_3(%arg0: i32, %arg1: i32) -> (i32, i32, i32) {
    %c0_i32 = arith.constant 0 : i32
    %c0_i32_0 = arith.constant 0 : i32
    %c0_i32_1 = arith.constant 0 : i32
    return %arg0, %c0_i32, %c0_i32_0 : i32, i32, i32
  }
}

</mosaic_0001>

<bundles_post_ra>
// kernel: tpu_custom_call.1
= control target key start
LH: loop header
LB: loop body
LE: loop exit
PB: predicated region body
PF: predicated region fallthrough
CT: control target
= control target key end

     0   :  { %8 = vsyncpa [#allocation5], 0  ;;  %s1191_s0 = inlined_call_operand.hbm [shape: bf16[2,32,1024], index: 0, kind: input, shape index: {}]   ;;  %s1192_s1 = inlined_call_operand.vmem [shape: f32[32,2], index: 1, kind: input, shape index: {}]   ;;  %s1193_s2 = inlined_call_operand.vmem [shape: f32[2,32], index: 2, kind: input, shape index: {}]   ;;  %s1194_s3 = inlined_call_operand.hbm [shape: f32[2,1,32], index: 3, kind: output, shape index: {}]  }
   0x1   :  { %10 = vsyncpa [#allocation5 + $0x1], 0 }
   0x2   :  { %11 = vsyncpa [#allocation6], 0 }
   0x3   :  { %13 = vsyncpa [#allocation6 + $0x1], 0  ;;  %s976_s12 = smov 0   ;;  %s978_s13 = smov 0  }
   0x4   :  { %s980_s14 = smov 0   ;;  %s982_s15 = smov 0  }
   0x5   :  { %s984_s16 = smov 0   ;;  %s986_s17 = smov 0  }
   0x6   :  { %s988_s18 = smov 0   ;;  %s990_s19 = smov 0  }
   0x7   :  { %s992_s20 = smov 0   ;;  %s994_s21 = smov 0  }
   0x8   :  { %s996_s22 = smov 0  }
   0x9 LB: > { %1199 = sst [smem:[#allocation10_spill]] %s925_s17  ;;  %s642_s23 = sadd.s32 4294967295, %s945_s22   ;;  %s945_s22 = sphi %s996_s22, %s19_s22   ;;  %s941_s21 = sphi %s994_s21, %s1213_s21   ;;  %s937_s20 = sphi %s992_s20, %s1220_s20   ;;  %s933_s19 = sphi %s990_s19, %s1211_s19   ;;  %s929_s18 = sphi %s988_s18, %s1219_s18   ;;  %s925_s17 = sphi %s986_s17, %s1210_s17   ;;  %s921_s16 = sphi %s984_s16, %s1218_s16   ;;  %s917_s15 = sphi %s982_s15, %s1217_s15   ;;  %s913_s14 = sphi %s980_s14, %s1216_s14   ;;  %s909_s13 = sphi %s978_s13, %s1215_s13   ;;  %s905_s12 = sphi %s976_s12, %s1214_s12  }
   0xa   : > { %1200 = sst [smem:[#allocation11_spill]] %s941_s21  ;;  %s643_s24 = sadd.s32 4294967294, %s945_s22  }
   0xb   : > { %s28_s25 = sadd.s32 1, %s937_s20  ;;  %s31_s26 = sadd.s32 1, %s941_s21 }
   0xc   : > { %p29_p0 = scmp.ge.s32.totalorder %s28_s25, 2  ;;  %s40_s27 = sadd.s32 1, %s925_s17 }
   0xd   : > { %p47_p1 = scmp.ne.s32.totalorder %s925_s17, %s921_s16  ;;  %p48_p2 = scmp.eq.s32.totalorder %s945_s22, 0 }
   0xe   : > { %s1222_s25 = smov (%p29_p0, %s28_s25), 0  ;;  %s1224_s26 = smov (!%p29_p0, %s31_s26), %s941_s21 }
   0xf   : > { %1201 = sst [smem:[#allocation12_spill]] %s1222_s25  ;;  %s36_s28 = ssub.s32 %s937_s20, %s1222_s25 }
  0x10   : > { %p1042_p3 = por %p48_p2, %p47_p1  ;;  %p33_p4 = scmp.ge.s32.totalorder %s1224_s26, 2 }
  0x11   : > { %p53_p5 = scmp.ne.s32.totalorder %s921_s16, %s917_s15  ;;  %p54_p6 = scmp.eq.s32.totalorder %s642_s23, 0 }
  0x12   : > { %s108_s30 = sadd.s32 1, %s913_s14  ;;  %s1226_s26 = smov (%p33_p4, %s1224_s26), 0 }
  0x13   : > { %1203 = sst [smem:[#allocation13_spill]] %s1226_s26  ;;  %p1050_p7 = por %p54_p6, %p53_p5 }
  0x14   : > { %p118_p8 = scmp.ne.s32.totalorder %s913_s14, %s909_s13  ;;  %s35_s5 = ssub.s32 %s941_s21, %s1226_s26 }
  0x15   : > { %p119_p9 = scmp.eq.s32.totalorder %s642_s23, 3  ;;  %s37_s6 = sor.u32 %s36_s28, %s35_s5 }
  0x16   : > { %p106_p10 = scmp.eq.s32.totalorder %s35_s5, 0  ;;  %p38_p11 = scmp.eq.s32.totalorder %s37_s6, 0 }
  0x17   : > { %p1058_p12 = por %p119_p9, %p118_p8  ;;  %p124_p13 = scmp.ne.s32.totalorder %s909_s13, %s905_s12 }
  0x18   : > { %s1063_s8 = scalar_select %p106_p10, %s913_s14, %s108_s30  }
  0x19   : > { %s1066_s9 = scalar_select %p38_p11, %s925_s17, %s40_s27  }
  0x1a   : > { %p125_p0 = scmp.eq.s32.totalorder %s643_s24, 3  ;;  %p696_p1 = scmp.lt.s32.totalorder %s945_s22, 4 }
  0x1b   : > { %1206 = sst [smem:[#allocation14_spill]] %s1066_s9  ;;  %s151_s11 = sand.u32 1, %s925_s17  }
  0x1c   : > { %p1071_p2 = por %p125_p0, %p124_p13  ;;  %s646_s15 = sshll.u32 %s151_s11, 6 }
  0x1d   : > { %s647_s23 = sshll.u32 %s937_s20, 2  ;;  %s648_s28 = sshll.u32 %s941_s21, 5 }
  0x1e   : > { %s155_s5 = scalar_lea.vmem [#allocation4], %s646_s15  ;;  %s161_s26 = sadd.s32 %s648_s28, %s647_s23 }
  0x1f   : > { %s164_s6 = sshll.u32 %s155_s5, 4  ;;  %s649_s30 = sshll.u32 %s161_s26, 6  ;;  %s165_s6 = int_to_ptr.vmem [resolvable:$true] %s164_s6 }
  0x20   : > { %p1080_p4 = pnand %p696_p1, %p1042_p3  ;;  %s163_s9 = scalar_lea.hbm %s1191_s0, %s649_s30 }
  0x21   : > { %p650_p5 = scmp.ge.s32.totalorder %s945_s22, 1  ;;  %s152_s17 = scalar_lea.sflag [#allocation5], %s151_s11 }
  0x22   : > { %p799_p6 = pneg %p1080_p4  ;;  %s810_s21 = scalar_lea.vmem %s165_s6, 1024 }
  0x23   : > { %p811_p8 = scmp.ne.s32.totalorder %s165_s6, %s810_s21  ;;  %s947_s15 = smov [#allocation4]  }
  0x24   : > { %s815_s26 = sshll.u32 %s947_s15, 4  ;;  %s816_s26 = int_to_ptr.vmem [resolvable:$false] %s815_s26 }
  0x25   : > { %p813_p9 = pnand %p811_p8, %p799_p6  ;;  %s817_s29 = scalar_lea.vmem %s816_s26, 2048 }
  0x26   : > { %p818_p3 = scmp.lt.s32.totalorder %s165_s6, %s816_s26  ;;  %p819_p11 = scmp.lt.s32.totalorder %s817_s29, %s810_s21 }
  0x27   : > { %p814_p10 = pneg %p813_p9 }
  0x28   : > { %p820_p13 = por %p819_p11, %p818_p3 }
  0x2a   : > { %p821_p0 = pnand %p820_p13, %p814_p10 }
  0x2c   : > { %824 = shalt.err (!%p821_p0)
}
  0x2d   : > { %s948_s25 = smov 512   ;;  %s949_s11 = smov 256  }
  0x2e   : > { %s950_s23 = smov 16   ;;  %p172_p1 = scmp.lt.s32.totalorder %s945_s22, 5 }
  0x2f   : > { %691 = dma.hbm_to_vmem [thread:$0]  (!%p1080_p4), %s163_s9, 1024, %s165_s6, %s152_s17, %s948_s25, %s949_s11, %s950_s23  }
  0x30   : > { %p173_p6 = pnand %p650_p5, %p172_p1 }
  0x31   : > { %s178_s28 = sand.u32 (!%p173_p6), 1, %s921_s16  }
  0x32   : > { %176 = sbr.rel (%p173_p6) target bundleno = 691 (0x2b3), region = 32  ;;  %s651_s5 = sshll.u32 (!%p173_p6), %s178_s28, 6 }
  0x33   : > { %s179_s21 = scalar_lea.sflag (!%p173_p6), [#allocation5], %s178_s28  ;;  %s1096_s30 = scalar_lea.vmem (!%p173_p6), [#allocation4], %s651_s5 }
  0x37   : > { %896 = dma.done.wait (%p1050_p7), %s179_s21, 1024  }
  0x38   : > { %898 = vsyncadd (%p1050_p7), %s179_s21, 4294966272  ;;  %s202_s27 = sand.u32 1, %s909_s13   ;;  %p652_p4 = scmp.ne.s32.totalorder %s929_s18, 0 }
  0x39   : > { %s1105_s17 = scalar_lea.vmem [#allocation7], %s202_s27 }
  0x3a   : > { %208 = sbr.rel (%p652_p4) target bundleno = 68 (0x44), region = 40 }
  0x3f   : > { %v951_v0 = vmov 0.0   ;;  %v952_v1 = vmov -inf  }
  0x40   : > { %209 = vst [vmem:[#allocation2 + $0x10] sm:$0xff] %v951_v0  ;;  %210 = vst [vmem:[#allocation2] sm:$0xff] %v951_v0 }
  0x41   : > { %211 = vst [vmem:[#allocation2 + $0x18] sm:$0xff] %v951_v0  ;;  %212 = vst [vmem:[#allocation2 + $0x8] sm:$0xff] %v951_v0 }
  0x42   : > { %213 = vst [vmem:[#allocation3] sm:$0xff] %v952_v1  ;;  %214 = vst [vmem:[#allocation3 + $0x18] sm:$0xff] %v952_v1 }
  0x43   : > { %215 = vst [vmem:[#allocation3 + $0x8] sm:$0xff] %v952_v1  ;;  %216 = vst [vmem:[#allocation3 + $0x10] sm:$0xff] %v952_v1 }
  0x44 PF: > { %v217_v2 = vld [vmem:[%s1096_s30] sm:$0xff]  ;;  %v218_v3 = vld [vmem:[%s1096_s30 + $0x8] sm:$0xff]  ;;  %v219_v9 = vld [vmem:[%s1096_s30 + $0x10] sm:$0xff]  ;;  %p653_p7 = scmp.ne.s32.totalorder %s929_s18, 1 }
  0x45   : > { %v225_v5 = vunpack.c.l.bf16 %v217_v2  ;;  %v226_v6 = vunpack.c.h.bf16 %v217_v2  ;;  %v227_v7 = vunpack.c.l.bf16 %v218_v3  ;;  %v228_v8 = vunpack.c.h.bf16 %v218_v3  ;;  %v220_v10 = vld [vmem:[%s1096_s30 + $0x18] sm:$0xff]  ;;  %v221_v16 = vld [vmem:[%s1096_s30 + $0x20] sm:$0xff]  ;;  %v222_v17 = vld [vmem:[%s1096_s30 + $0x28] sm:$0xff] }
  0x46   : > { %v229_v12 = vunpack.c.l.bf16 %v219_v9  ;;  %v230_v13 = vunpack.c.h.bf16 %v219_v9  ;;  %v231_v14 = vunpack.c.l.bf16 %v220_v10  ;;  %v232_v15 = vunpack.c.h.bf16 %v220_v10  ;;  %v223_v23 = vld [vmem:[%s1096_s30 + $0x30] sm:$0xff]  ;;  %v224_v24 = vld [vmem:[%s1096_s30 + $0x38] sm:$0xff] }
  0x47   : > { %v241_v4 = vld [vmem:[#allocation2 + $0x10] sm:$0xff]  ;;  %v242_v11 = vld [vmem:[#allocation2] sm:$0xff]  ;;  %v233_v20 = vunpack.c.l.bf16 %v221_v16  ;;  %v234_v21 = vunpack.c.h.bf16 %v221_v16  ;;  %v235_v22 = vunpack.c.l.bf16 %v222_v17  ;;  %v236_v27 = vunpack.c.h.bf16 %v222_v17 }
  0x48   : > { %v243_v18 = vld [vmem:[#allocation2 + $0x18] sm:$0xff]  ;;  %v249_v19 = vadd.f32 %v241_v4, %v225_v5  ;;  %v244_v25 = vld [vmem:[#allocation2 + $0x8] sm:$0xff]  ;;  %v250_v26 = vadd.f32 %v242_v11, %v229_v12  ;;  %v237_v28 = vunpack.c.l.bf16 %v223_v23  ;;  %v238_v29 = vunpack.c.h.bf16 %v223_v23 }
  0x49   : > { %v245_v30 = vld [vmem:[#allocation3] sm:$0xff]  ;;  %v246_v31 = vld [vmem:[#allocation3 + $0x18] sm:$0xff]  ;;  %v251_v34 = vadd.f32 %v243_v18, %v233_v20  ;;  %v239_v35 = vunpack.c.l.bf16 %v224_v24  ;;  %v240_v36 = vunpack.c.h.bf16 %v224_v24 }
  0x4a   : > { %v247_v32 = vld [vmem:[#allocation3 + $0x8] sm:$0xff]  ;;  %v257_v33 = vadd.f32 %v249_v19, %v226_v6  ;;  %v248_v37 = vld [vmem:[#allocation3 + $0x10] sm:$0xff]  ;;  %v258_v38 = vadd.f32 %v250_v26, %v230_v13  ;;  %v252_v39 = vadd.f32 %v244_v25, %v237_v28  ;;  %v253_v40 = vmax.f32 %v245_v30, %v225_v5 }
  0x4b   : > { %v254_v41 = vmax.f32 %v246_v31, %v229_v12  ;;  %v259_v43 = vadd.f32 %v251_v34, %v234_v21  ;;  %v255_v44 = vmax.f32 %v247_v32, %v233_v20  ;;  %v256_v45 = vmax.f32 %v248_v37, %v237_v28 }
  0x4c   : > { %v265_v42 = vadd.f32 %v257_v33, %v227_v7  ;;  %v266_v46 = vadd.f32 %v258_v38, %v231_v14  ;;  %v260_v47 = vadd.f32 %v252_v39, %v238_v29  ;;  %v261_v48 = vmax.f32 %v253_v40, %v226_v6 }
  0x4d   : > { %v262_v49 = vmax.f32 %v254_v41, %v230_v13  ;;  %v267_v51 = vadd.f32 %v259_v43, %v235_v22  ;;  %v263_v52 = vmax.f32 %v255_v44, %v234_v21  ;;  %v264_v53 = vmax.f32 %v256_v45, %v238_v29 }
  0x4e   : > { %v273_v50 = vadd.f32 %v265_v42, %v228_v8  ;;  %v274_v54 = vadd.f32 %v266_v46, %v232_v15  ;;  %v268_v55 = vadd.f32 %v260_v47, %v239_v35  ;;  %v269_v56 = vmax.f32 %v261_v48, %v227_v7 }
  0x4f   : > { %v270_v57 = vmax.f32 %v262_v49, %v231_v14  ;;  %v275_v58 = vadd.f32 %v267_v51, %v236_v27  ;;  %v271_v59 = vmax.f32 %v263_v52, %v235_v22  ;;  %v272_v60 = vmax.f32 %v264_v53, %v239_v35 }
  0x50   : > { %281 = vst [vmem:[#allocation2 + $0x10] sm:$0xff] %v273_v50  ;;  %282 = vst [vmem:[#allocation2] sm:$0xff] %v274_v54  ;;  %v276_v61 = vadd.f32 %v268_v55, %v240_v36  ;;  %v277_v62 = vmax.f32 %v269_v56, %v228_v8  ;;  %292 = sbr.rel (%p653_p7) target bundleno = 668 (0x29c), region = 44 }
  0x51   : > { %v278_v63 = vmax.f32 %v270_v57, %v232_v15  ;;  %283 = vst [vmem:[#allocation2 + $0x18] sm:$0xff] %v275_v58  ;;  %v279_v0 = vmax.f32 %v271_v59, %v236_v27  ;;  %v280_v1 = vmax.f32 %v272_v60, %v240_v36 }
  0x52   : > { %284 = vst [vmem:[#allocation2 + $0x8] sm:$0xff] %v276_v61  ;;  %285 = vst [vmem:[#allocation3] sm:$0xff] %v277_v62 }
  0x53   : > { %286 = vst [vmem:[#allocation3 + $0x18] sm:$0xff] %v278_v63  ;;  %287 = vst [vmem:[#allocation3 + $0x8] sm:$0xff] %v279_v0 }
  0x54   : > { %288 = vst [vmem:[#allocation3 + $0x10] sm:$0xff] %v280_v1 }
  0x55   : > { %v953_v10 = vmov 0.0   ;;  %v382_v11 = vld [vmem:[%s1192_s1 + $0x18] sm:$0xff]  ;;  %v381_v12 = vld [vmem:[%s1192_s1 + $0x10] sm:$0xff]  ;;  %v380_v13 = vld [vmem:[%s1192_s1 + $0x8] sm:$0xff]  ;;  %vm954_vm0 = vmmov 0   ;;  %v325_v15 = vlaneseq  ;;  %vm336_vm1 = vcmask 130112  }
  0x56   : > { %668 = vmatprep.subr.mxu0 %v953_v10  ;;  %679 = vmatprep.subr.mxu1 %v953_v10  ;;  %v379_v14 = vld [vmem:[%s1192_s1] sm:$0xff]  ;;  %vm343_vm2 = vcmask 195712   ;;  %vm350_vm3 = vcmask 261312   ;;  %vm377_vm4 = vcmask 1040384   ;;  %vm383_vm5 = vcmask 261120  }
  0x57   : > { %v293_v3 = vld [vmem:[#allocation2 + $0x10] sm:$0xff]  ;;  %v294_v5 = vld [vmem:[#allocation2] sm:$0xff]  ;;  %669 = vmatpush3.msra.mxu0 %v382_v11  ;;  %676 = vmatprep.mubr.msk.f32.mxu0 %vm954_vm0, %v953_v10  ;;  %v326_v16 = vand.u32 127, %v325_v15  ;;  %v328_v18 = vshrl.u32 %v325_v15, 7  ;;  %vm463_vm6 = vcmask 1041408   ;;  %vm459_vm7 = vcmask 15360  }
  0x58   : > { %v295_v2 = vld [vmem:[#allocation2 + $0x18] sm:$0xff]  ;;  %297 = vadd.xlane.f32.xlu0 %v293_v3  ;;  %670 = vmatprep.subr.mxu0 %v953_v10  ;;  %v458_v52 = vld [vmem:[%s1193_s2] sm:$0x3]  ;;  %vm547_vm8 = vcmask 253952  }
  0x59   : > { %301 = vadd.xlane.f32.xlu1 %v295_v2  ;;  %v296_v4 = vld [vmem:[#allocation2 + $0x8] sm:$0xff]  ;;  %v309_v7 = vld [vmem:[#allocation3] sm:$0xff]  ;;  %671 = vmatpush3.msra.mxu0 %v381_v12  ;;  %v331_v17 = vadd.s32 4294967288, %v326_v16  ;;  %v338_v21 = vadd.s32 4294967280, %v326_v16  ;;  %v329_v23 = vsub.s32 %v326_v16, %v328_v18  ;;  %v345_v25 = vadd.s32 4294967272, %v326_v16 }
  0x5a   : > { %v310_v6 = vld [vmem:[#allocation3 + $0x18] sm:$0xff]  ;;  %v311_v8 = vld [vmem:[#allocation3 + $0x8] sm:$0xff]  ;;  %672 = vmatprep.subr.mxu0 %v953_v10  ;;  %681 = vmatprep.mubr.msk.f32.mxu1 %vm954_vm0, %v953_v10 }
  0x5b   : > { %v312_v9 = vld [vmem:[#allocation3 + $0x10] sm:$0xff]  ;;  %673 = vmatpush3.msra.mxu0 %v380_v13  ;;  %v334_v22 = vsub.s32 %v331_v17, %v328_v18  ;;  %v341_v29 = vsub.s32 %v338_v21, %v328_v18  ;;  %v348_v33 = vsub.s32 %v345_v25, %v328_v18  ;;  %680 = vmatpush3.msk.msra.mxu1 %vm463_vm6, %v458_v52 }
  0x5c   : > { %299 = vadd.xlane.f32.xlu0 %v294_v5  ;;  %674 = vmatprep.subr.mxu0 %v953_v10 }
  0x5d   : > { %303 = vadd.xlane.f32.xlu1 %v296_v4  ;;  %675 = vmatpush3.msra.mxu0 %v379_v14 }
  0x60   : > { %313 = vmax.xlane.f32.xlu0 %v309_v7 }
  0x61   : > { %315 = vmax.xlane.f32.xlu1 %v310_v6 }
  0x64   : > { %317 = vmax.xlane.f32.xlu0 %v311_v8 }
  0x65   : > { %319 = vmax.xlane.f32.xlu1 %v312_v9 }
  0xe1   : > { %v298_v20 = vpop.xlane.xlu0 %297 }
  0xe2   : > { %v302_v19 = vpop.xlane.xlu1 %301  ;;  %v305_v24 = vmul.f32 0.0009765625, %v298_v20 }
  0xe3   : > { %v307_v30 = vmul.f32 0.0009765625, %v302_v19 }
  0xe4   : > { %v330_v32 = vrot.slane %v305_v24, %v329_v23 }
  0xe5   : > { %v300_v27 = vpop.xlane.xlu0 %299  ;;  %v342_v40 = vrot.slane %v307_v30, %v341_v29 }
  0xe6   : > { %v304_v26 = vpop.xlane.xlu1 %303  ;;  %v306_v28 = vmul.f32 0.0009765625, %v300_v27 }
  0xe7   : > { %v308_v34 = vmul.f32 0.0009765625, %v304_v26 }
  0xe8   : > { %v335_v31 = vrot.slane %v306_v28, %v334_v22 }
  0xe9   : > { %v314_v36 = vpop.xlane.xlu0 %313  ;;  %v349_v41 = vrot.slane %v308_v34, %v348_v33 }
  0xea   : > { %v316_v35 = vpop.xlane.xlu1 %315  ;;  %v337_v37 = vsel %vm336_vm1, %v335_v31, %v330_v32  ;;  %v360_v39 = vrot.slane %v314_v36, %v329_v23 }
  0xeb   : > { %v364_v38 = vrot.slane %v316_v35, %v334_v22  ;;  %v344_v46 = vsel %vm343_vm2, %v342_v40, %v337_v37 }
  0xec   : > { %v351_v50 = vsel %vm350_vm3, %v349_v41, %v344_v46 }
  0xed   : > { %v318_v42 = vpop.xlane.xlu0 %317  ;;  %v365_v47 = vsel %vm336_vm1, %v364_v38, %v360_v39 }
  0xee   : > { %v320_v43 = vpop.xlane.xlu1 %319  ;;  %v369_v44 = vrot.slane %v318_v42, %v341_v29 }
  0xef   : > { %v374_v45 = vrot.slane %v320_v43, %v348_v33 }
  0xf0   : > { %v370_v48 = vsel %vm343_vm2, %v369_v44, %v365_v47 }
  0xf1   : > { %v375_v49 = vsel %vm350_vm3, %v374_v45, %v370_v48 }
  0xf2   : > { %v378_v51 = vsel %vm377_vm4, %v351_v50, %v375_v49 }
  0xf3   : > { %677 = vmatmul.mubr.msk.f32.vlgmr.msra.gmra.mxu0 %vm383_vm5, %v378_v51 }
 0x1b3   : > { %v453_v53 = vpop.f32.mrf.mxu0 }
 0x1b4   : > { %v457_v54 = vmax.f32 %v453_v53, 0.0 }
 0x1b5   : > { %v678_v55 = vpop.f32.mrf.mxu0 }
 0x1b6   : > { %682 = vmatmul.mubr.msk.f32.vlgmr.msra.gmra.mxu1 %vm459_vm7, %v457_v54 }
 0x276   : > { %v533_v56 = vpop.f32.mrf.mxu1 }
 0x277   : > { %v538_v57 = vrot.slane %v533_v56, 1 }
 0x278   : > { %v683_v58 = vpop.f32.mrf.mxu1 }
 0x279   : > { %v540_v59 = vadd.f32 %v538_v57, %v533_v56 }
 0x27b   : > { %v657_v60 = vmul.f32 -1.442695, %v540_v59 }
 0x27d   : > { %793 = vpow2.f32 %v657_v60 }
 0x28a   : > { %v794_v61 = vpop.eup %793 }
 0x28b   : > { %v544_v62 = vadd.f32 1.0, %v794_v61 }
 0x28d   : > { %795 = vrcp.f32 %v544_v62 }
 0x29a   : > { %v796_v63 = vpop.eup %795 }
 0x29b   : > { %548 = vst.msk [vmem:[%s1105_s17] sm:$0x1] %vm547_vm8, %v796_v63 }
 0x29c PF: > { %s658_s23 = sshll.u32 %s933_s19, 4  ;;  %s562_s30 = sshll.u32 %s1105_s17, 4  ;;  %s563_s30 = int_to_ptr.vmem [resolvable:$true] %s562_s30 }
 0x29d   : > { %s560_s21 = scalar_lea.hbm %s1194_s3, %s658_s23  ;;  %s550_s18 = scalar_lea.sflag [#allocation6], %s202_s27 }
 0x29e   : > { %s825_s4 = scalar_lea.vmem %s563_s30, 16  ;;  %s955_s9 = smov [#allocation7]  }
 0x29f   : > { %p826_p5 = scmp.ne.s32.totalorder %s563_s30, %s825_s4  ;;  %s829_s6 = sshll.u32 %s955_s9, 4  ;;  %s830_s6 = int_to_ptr.vmem [resolvable:$false] %s829_s6 }
 0x2a0   : > { %s831_s24 = scalar_lea.vmem %s830_s6, 32  ;;  %p832_p10 = scmp.lt.s32.totalorder %s563_s30, %s830_s6 }
 0x2a1   : > { %p827_p8 = pnand %p826_p5, %p1058_p12  ;;  %p833_p3 = scmp.lt.s32.totalorder %s831_s24, %s825_s4 }
 0x2a3   : > { %p828_p9 = pneg %p827_p8  ;;  %p834_p11 = por %p833_p3, %p832_p10 }
 0x2a5   : > { %p835_p13 = pnand %p834_p11, %p828_p9 }
 0x2a7   : > { %838 = shalt.err (!%p835_p13)
}
 0x2a8   : > { %s839_s19 = scalar_lea.hbm %s560_s21, 16  ;;  %s843_s15 = scalar_lea.hbm %s1194_s3, 32 }
 0x2a9   : > { %p840_p0 = scmp.ne.s32.totalorder %s560_s21, %s839_s19  ;;  %p844_p4 = scmp.lt.s32.totalorder %s560_s21, %s1194_s3 }
 0x2aa   : > { %p845_p7 = scmp.lt.s32.totalorder %s843_s15, %s839_s19 }
 0x2ab   : > { %p841_p1 = pnand %p840_p0, %p1058_p12 }
 0x2ac   : > { %p846_p5 = por %p845_p7, %p844_p4 }
 0x2ad   : > { %p842_p6 = pneg %p841_p1 }
 0x2af   : > { %p847_p8 = pnand %p846_p5, %p842_p6 }
 0x2b1   : > { %850 = shalt.err (!%p847_p8)
}
 0x2b2   : > { %686 = dma.vmem_to_hbm [thread:$0]  (%p1058_p12), %s563_s30, 16, %s560_s21, %s550_s18  }
 0x2b3 PF: > { %p697_p9 = scmp.ge.s32.totalorder %s945_s22, 2  ;;  %s574_s25 = sand.u32 1, %s905_s12  }
 0x2b4   : > { %s575_s11 = scalar_lea.sflag [#allocation6], %s574_s25 }
 0x2b5   : > { %p693_p10 = pnand %p697_p9, %p1071_p2 }
 0x2b7   : > { %p694_p3 = pneg %p693_p10 }
 0x2b9   : > { %900 = dma.done.wait (%p694_p3), %s575_s11, 16  }
 0x2ba   : > { %902 = vsyncadd (%p694_p3), %s575_s11, 4294967280  ;;  %s19_s22 = sadd.s32 1, %s945_s22   ;;  %s1209_s7 = sld [smem:[#allocation10_spill]] }
 0x2bb   : > { %p16_p11 = scmp.ge.s32.totalorder %s19_s22, 6   ;;  %s1210_s17 = sld [smem:[#allocation14_spill]] }
 0x2bc   : > { %s1211_s19 = sld [smem:[#allocation11_spill]]  ;;  %s1214_s12 = smov %s909_s13 }
 0x2bd   : > { %s1212_s23 = sld [smem:[#allocation12_spill]]  ;;  %s1215_s13 = smov %s913_s14 }
 0x2be   : > { %s1213_s21 = sld [smem:[#allocation13_spill]]  ;;  %s1216_s14 = smov %s1063_s8 }
 0x2bf   : > { %s1217_s15 = smov %s921_s16  ;;  %s1219_s18 = smov %s937_s20 }
 0x2c0   : > { %s1218_s16 = smov %s1209_s7  ;;  %18 = sbr.rel (!%p16_p11) target bundleno = 9 (0x9), region = 85 }
 0x2c3   : > { %s1220_s20 = smov %s1212_s23 }
 0x2c5   :  { %579 = vsyncpa [#allocation5], 1 }
 0x2c6   :  { %581 = vsyncpa [#allocation5 + $0x1], 1 }
 0x2c7   :  { %582 = vsyncpa [#allocation6], 1 }
 0x2c8   :  { %584 = vsyncpa [#allocation6 + $0x1], 1 }

</bundles_post_ra>
